<compile_context>
chip_gen: v7x
topology: tpu7x:2x2x1
jax: 0.10.0
libtpu: 0.0.40
codegen_flags: <defaults>
</compile_context>

<pallas_src>
import functools

import jax
import jax.numpy as jnp
from jax.experimental import pallas as pl
from jax.experimental.pallas import tpu as pltpu


def _mlp_kernel(*refs, num_weights, activation, negative_slope, transpose_out):
    """refs = (x_ref, w_ref_0, ..., w_ref_{n-1}, o_ref)."""
    x_ref = refs[0]
    w_refs = refs[1:1 + num_weights]
    o_ref = refs[1 + num_weights]

    # In-kernel f32 -> bf16 cast (saves a whole wrapper-side HBM pass over x).
    h = x_ref[...].astype(jnp.bfloat16)  # (tile_m, flat_dim)

    for w_ref in w_refs[:-1]:
        acc = jnp.dot(h, w_ref[...], preferred_element_type=jnp.float32)
        if activation == "relu":
            acc = jnp.maximum(acc, 0.0)
        elif activation == "leaky_relu":
            acc = jnp.where(acc > 0, acc, negative_slope * acc)
        else:
            raise ValueError(f"unknown activation {activation}")
        h = acc.astype(jnp.bfloat16)  # bf16 operand for the next MXU pass

    w_last = w_refs[-1][...]
    if transpose_out:
        # w_last is stored (out_dim, in) (PyTorch layout). Contract over `in`
        # so the result is (out_dim, tile_m): batch lands on the lane axis and
        # the store is lane-dense without padding out_dim to 128.
        acc = jax.lax.dot_general(
            w_last, h,
            dimension_numbers=(((1,), (1,)), ((), ())),
            preferred_element_type=jnp.float32)
    else:
        acc = jnp.dot(h, w_last, preferred_element_type=jnp.float32)
    o_ref[...] = acc.astype(o_ref.dtype)


def _round_up(x, m):
    return ((x + m - 1) // m) * m


def _vmem_capacity_bytes():
    try:
        return int(pltpu.get_tpu_info().vmem_capacity_bytes)
    except Exception:
        return 64 << 20  # conservative fallback (v7x per-TC VMEM)


def prepare_image_mlp_weights(weights):
    """One-time param prep (hoisted out of the forward pass).

    Args:
      weights: list of (in_features, out_features) f32 arrays (transposed vs.
        PyTorch nn.Linear.weight, so the kernel computes h @ W == h @ W_pt.T).

    Returns:
      (kernel_weights_bf16, out_dim, transpose_out)
    """
    out_dim = int(weights[-1].shape[1])
    transpose_out = out_dim < 128
    kernel_weights = [jnp.asarray(w).astype(jnp.bfloat16) for w in weights[:-1]]
    w_last = jnp.asarray(weights[-1])
    if transpose_out:
        # Store last layer as (out_dim, in) so the kernel can emit a
        # (out_dim, tile_m) lane-dense output block.
        kernel_weights.append(w_last.T.astype(jnp.bfloat16))
    else:
        out_pad = _round_up(out_dim, 128)
        if out_pad != out_dim:
            w_last = jnp.pad(w_last, ((0, 0), (0, out_pad - out_dim)))
        kernel_weights.append(w_last.astype(jnp.bfloat16))
    return kernel_weights, out_dim, transpose_out


def _tile_footprint_bytes(tile_m, flat_dim, kernel_weights, out_dim,
                          transpose_out):
    """Approx VMEM footprint for one batch tile (double-buffered I/O)."""
    out_row_bytes = (out_dim if transpose_out else _round_up(out_dim, 128)) * 4
    b = 2 * tile_m * flat_dim * 4                       # f32 x tiles (2 bufs)
    b += 2 * tile_m * out_row_bytes                     # f32 out tiles (2 bufs)
    b += 2 * sum(w.size * 2 for w in kernel_weights)    # resident bf16 weights
    hidden_widths = [w.shape[1] for w in kernel_weights[:-1]]
    b += tile_m * sum(6 * hw for hw in hidden_widths)   # f32 acc + bf16 h temps
    return b


def _pick_tile_m(B, flat_dim, kernel_weights, out_dim, transpose_out,
                 tile_m=None):
    budget = int(_vmem_capacity_bytes() * 0.6)  # generation-aware headroom

    def fits(t):
        return _tile_footprint_bytes(
            t, flat_dim, kernel_weights, out_dim, transpose_out) <= budget

    if tile_m is None:
        # Prefer a single grid step (per-step overhead ~0.35us) for small B.
        tile_m = min(B, 2048)
    tile_m = min(tile_m, B)
    while tile_m > 16 and not fits(tile_m):
        tile_m //= 2
    if tile_m < B:
        # Tiled batch: keep the block 128-aligned so the transposed output's
        # lane dim and x's sublane dim stay unmasked (and bf16 rows pack 16/vreg).
        tile_m = max(128, (tile_m // 128) * 128)
    return tile_m


def image_mlp_forward(x_nchw, prepared_weights, activation="relu",
                      negative_slope=0.01, tile_m=None):
    """Pallas implementation of ImageMLP.forward.

    Args:
      x_nchw: (B, C, H, W) float32 input.
      prepared_weights: output of prepare_image_mlp_weights().
      activation: 'relu' or 'leaky_relu'.
      negative_slope: slope for leaky_relu.
      tile_m: optional batch tile override.

    Returns:
      (B, output_dim) float32.
    """
    kernel_weights, out_dim, transpose_out = prepared_weights
    B = x_nchw.shape[0]
    x_flat = x_nchw.reshape(B, -1)  # same as torch .view(B, -1) (row-major)
    flat_dim = x_flat.shape[1]
    first_in = (kernel_weights[0].shape[1]
                if (len(kernel_weights) == 1 and transpose_out)
                else kernel_weights[0].shape[0])
    assert flat_dim == first_in, (flat_dim, first_in)

    tile_m = _pick_tile_m(B, flat_dim, kernel_weights, out_dim, transpose_out,
                          tile_m)
    # Ragged last tile (if any) is masked by Pallas; no padded copy of x.
    num_tiles = pl.cdiv(B, tile_m)

    kernel = functools.partial(
        _mlp_kernel,
        num_weights=len(kernel_weights),
        activation=activation,
        negative_slope=negative_slope,
        transpose_out=transpose_out)

    in_specs = [pl.BlockSpec((tile_m, flat_dim), lambda i: (i, 0))]
    for w in kernel_weights:
        # Constant index map: weights stay VMEM-resident across grid steps.
        in_specs.append(pl.BlockSpec(w.shape, lambda i: (0, 0)))

    if transpose_out:
        out_shape = jax.ShapeDtypeStruct((out_dim, B), jnp.float32)
        out_spec = pl.BlockSpec((out_dim, tile_m), lambda i: (0, i))
    else:
        out_pad = kernel_weights[-1].shape[1]
        out_shape = jax.ShapeDtypeStruct((B, out_pad), jnp.float32)
        out_spec = pl.BlockSpec((tile_m, out_pad), lambda i: (i, 0))

    footprint = _tile_footprint_bytes(tile_m, flat_dim, kernel_weights,
                                      out_dim, transpose_out)
    cap = _vmem_capacity_bytes()
    vmem_limit = int(min(int(cap * 0.8), max(32 << 20, 2 * footprint)))

    out = pl.pallas_call(
        kernel,
        out_shape=out_shape,
        grid=(num_tiles,),
        in_specs=in_specs,
        out_specs=out_spec,
        compiler_params=pltpu.CompilerParams(
            dimension_semantics=("parallel",),
            vmem_limit_bytes=vmem_limit),
    )(x_flat, *kernel_weights)

    if transpose_out:
        return out.T            # (B, out_dim)
    return out[:, :out_dim]


def make_image_mlp_params(key, flat_dim, mlp_hidden_dim, output_dim,
                          num_layers):
    """Deterministic weight init mirroring ImageMLP.__init__ layer shapes.

    Returns weights in (in_features, out_features) layout.
    """
    weights = []
    input_dim = flat_dim
    hidden = mlp_hidden_dim
    for _ in range(num_layers - 1):
        key, sub = jax.random.split(key)
        scale = 1.0 / jnp.sqrt(input_dim)
        weights.append(
            jax.random.uniform(sub, (input_dim, hidden), jnp.float32,
                               minval=-scale, maxval=scale))
        input_dim = hidden
        hidden = hidden // 2
    key, sub = jax.random.split(key)
    scale = 1.0 / jnp.sqrt(input_dim)
    weights.append(
        jax.random.uniform(sub, (input_dim, output_dim), jnp.float32,
                           minval=-scale, maxval=scale))
    return weights


def _reference_forward(x_nchw, weights, activation="relu", negative_slope=0.01):
    """Mixed-precision reference matching the kernel (bf16 operands, f32 acc)."""
    h = x_nchw.reshape(x_nchw.shape[0], -1).astype(jnp.bfloat16)
    out = None
    for li, w in enumerate(weights):
        acc = jnp.dot(h.astype(jnp.float32),
                      w.astype(jnp.bfloat16).astype(jnp.float32))
        if li != len(weights) - 1:
            if activation == "relu":
                acc = jnp.maximum(acc, 0.0)
            else:
                acc = jnp.where(acc > 0, acc, negative_slope * acc)
            h = acc.astype(jnp.bfloat16)
        else:
            out = acc
    return out


if __name__ == "__main__":
    # Shapes consistent with the module defaults:
    # flat_dim = C*H*W = 4*12*12 = 576 = 64*3*3, hidden = 128, output_dim = 1,
    # num_layers = 2 (ReLU between layers). At B=16 the kernel runs as a single
    # grid step (no batch padding, no wrapper-side casts).
    B, C, H, W = 16, 4, 12, 12
    flat_dim = C * H * W
    mlp_hidden_dim = 128
    output_dim = 1
    num_layers = 2

    key = jax.random.PRNGKey(0)
    key, xk = jax.random.split(key)
    x = jax.random.normal(xk, (B, C, H, W), jnp.float32)

    weights = make_image_mlp_params(key, flat_dim, mlp_hidden_dim,
                                    output_dim, num_layers)
    prepared = prepare_image_mlp_weights(weights)  # one-time bf16/layout prep

    out = image_mlp_forward(x, prepared, activation="relu")
    out = jax.block_until_ready(out)

    ref = _reference_forward(x, weights, activation="relu")
    assert out.shape == (B, output_dim), out.shape
    assert jnp.allclose(out, ref, atol=2e-3, rtol=2e-3), (out, ref)

    print("KERNEL_OK")
</pallas_src>

<mosaic_0001>
module attributes {stable_mosaic.version = 11 : i64} {
  func.func @_mlp_kernel(%arg0: i32, %arg1: memref<16x576xf32, #tpu.memory_space<vmem>>, %arg2: memref<576x128xbf16, #tpu.memory_space<vmem>>, %arg3: memref<1x128xbf16, #tpu.memory_space<vmem>>, %arg4: memref<1x16xf32, #tpu.memory_space<vmem>>) attributes {dimension_semantics = [#tpu.dimension_semantics<parallel>], iteration_bounds = array<i64: 1>, scalar_prefetch = 0 : i64, scratch_operands = 0 : i64, tpu.core_type = #tpu.core_type<tc>, window_params = [{transform_indices = @transform_0, window_bounds = array<i64: 16, 576>}, {pipeline_mode = #tpu.pipeline_mode<synchronous>, transform_indices = @transform_1, window_bounds = array<i64: 576, 128>}, {pipeline_mode = #tpu.pipeline_mode<synchronous>, transform_indices = @transform_2, window_bounds = array<i64: 1, 128>}, {transform_indices = @transform_3, window_bounds = array<i64: 1, 16>}]} {
    %c0 = arith.constant 0 : index
    %c0_0 = arith.constant 0 : index
    %0 = vector.load %arg1[%c0, %c0_0] : memref<16x576xf32, #tpu.memory_space<vmem>>, vector<16x576xf32>
    %1 = arith.truncf %0 : vector<16x576xf32> to vector<16x576xbf16>
    %c0_1 = arith.constant 0 : index
    %c0_2 = arith.constant 0 : index
    %2 = vector.load %arg2[%c0_1, %c0_2] : memref<576x128xbf16, #tpu.memory_space<vmem>>, vector<576x128xbf16>
    %cst = arith.constant dense<0.000000e+00> : vector<16x128xf32>
    %3 = tpu.matmul %1, %2, %cst {dimension_numbers = #tpu.dot_dimension_numbers<[1], [0], [0], [1], [0, 0, 1, 1], [], []>} : vector<16x576xbf16>, vector<576x128xbf16>, vector<16x128xf32> -> vector<16x128xf32>
    %cst_3 = arith.constant 0.000000e+00 : f32
    %4 = vector.broadcast %cst_3 : f32 to vector<16x128xf32>
    %5 = arith.maximumf %3, %4 : vector<16x128xf32>
    %6 = arith.truncf %5 : vector<16x128xf32> to vector<16x128xbf16>
    %c0_4 = arith.constant 0 : index
    %c0_5 = arith.constant 0 : index
    %7 = vector.load %arg3[%c0_4, %c0_5] : memref<1x128xbf16, #tpu.memory_space<vmem>>, vector<1x128xbf16>
    %cst_6 = arith.constant dense<0.000000e+00> : vector<1x16xf32>
    %8 = tpu.matmul %7, %6, %cst_6 {dimension_numbers = #tpu.dot_dimension_numbers<[1], [1], [0], [0], [0, 0, 1, 0], [], []>} : vector<1x128xbf16>, vector<16x128xbf16>, vector<1x16xf32> -> vector<1x16xf32>
    %c0_7 = arith.constant 0 : index
    %c0_8 = arith.constant 0 : index
    %9 = vector.load %arg4[%c0_7, %c0_8] : memref<1x16xf32, #tpu.memory_space<vmem>>, vector<1x16xf32>
    tpu.vector_store %arg4[%c0_7, %c0_8], %8 {strides = array<i32>} : memref<1x16xf32, #tpu.memory_space<vmem>>, vector<1x16xf32>,
    return
  }
  func.func @transform_0(%arg0: i32) -> (i32, i32) {
    %c0_i32 = arith.constant 0 : i32
    %c0_i32_0 = arith.constant 0 : i32
    return %arg0, %c0_i32 : i32, i32
  }
  func.func @transform_1(%arg0: i32) -> (i32, i32) {
    %c0_i32 = arith.constant 0 : i32
    %c0_i32_0 = arith.constant 0 : i32
    %c0_i32_1 = arith.constant 0 : i32
    return %c0_i32, %c0_i32_0 : i32, i32
  }
  func.func @transform_2(%arg0: i32) -> (i32, i32) {
    %c0_i32 = arith.constant 0 : i32
    %c0_i32_0 = arith.constant 0 : i32
    %c0_i32_1 = arith.constant 0 : i32
    return %c0_i32, %c0_i32_0 : i32, i32
  }
  func.func @transform_3(%arg0: i32) -> (i32, i32) {
    %c0_i32 = arith.constant 0 : i32
    %c0_i32_0 = arith.constant 0 : i32
    return %c0_i32, %arg0 : i32, i32
  }
}

</mosaic_0001>

<bundles_post_ra>
// kernel: tpu_custom_call.1
= control target key start
LH: loop header
LB: loop body
LE: loop exit
PB: predicated region body
PF: predicated region fallthrough
CT: control target
= control target key end

     0   :  { %8 = vsyncpa [#allocation3], 0  ;;  %s827_s0 = inlined_call_operand.hbm [shape: f32[16,576], index: 0, kind: input, shape index: {}]   ;;  %s828_s1 = inlined_call_operand.hbm [shape: bf16[576,128], index: 1, kind: input, shape index: {}]   ;;  %s829_s2 = inlined_call_operand.vmem [shape: bf16[1,128], index: 2, kind: input, shape index: {}]   ;;  %s830_s3 = inlined_call_operand.hbm [shape: f32[1,16], index: 3, kind: output, shape index: {}]  }
   0x1   :  { %9 = vsyncpa [#allocation6], 0 }
   0x2   :  { %10 = vsyncpa [#allocation4], 0  ;;  %s759_s12 = smov [#allocation2]   ;;  %s687_s16 = scalar_lea.hbm %s827_s0, 1280 }
   0x3   :  { %s16_s13 = sshll.u32 %s759_s12, 4  ;;  %p688_p0 = scmp.ne.s32.totalorder %s827_s0, %s687_s16  ;;  %s17_s13 = int_to_ptr.vmem [resolvable:$true] %s16_s13 }
   0x4   :  { %p691_p1 = scmp.lt.u32.totalorder %s687_s16, %s827_s0 }
   0x6   :  { %p693_p2 = pnand %p691_p1, %p688_p0 }
   0x8   :  { %696 = shalt.err (!%p693_p2)
}
   0x9   :  { %s697_s21 = scalar_lea.vmem %s17_s13, 1280  ;;  %p702_p4 = scmp.lt.s32.totalorder %s17_s13, %s17_s13 }
   0xa   :  { %p698_p3 = scmp.ne.s32.totalorder %s17_s13, %s697_s21  ;;  %p703_p5 = scmp.lt.s32.totalorder %s697_s21, %s697_s21 }
   0xc   :  { %p704_p6 = por %p703_p5, %p702_p4 }
   0xe   :  { %p705_p7 = pnand %p704_p6, %p698_p3 }
  0x10   :  { %708 = shalt.err (!%p705_p7)
}
  0x11   :  { %s760_s22 = smov 640   ;;  %s761_s23 = smov 40  }
  0x12   :  { %22 = dma.hbm_to_vmem [thread:$0]  %s827_s0, 1280, %s17_s13, [#allocation3], %s760_s22, %s760_s22, %s761_s23  }
  0x13   :  { %s762_s26 = smov [#allocation5]   ;;  %s709_s30 = scalar_lea.hbm %s828_s1, 4608 }
  0x14   :  { %s28_s27 = sshll.u32 %s762_s26, 4  ;;  %p710_p8 = scmp.ne.s32.totalorder %s828_s1, %s709_s30  ;;  %s29_s27 = int_to_ptr.vmem [resolvable:$true] %s28_s27 }
  0x15   :  { %p713_p9 = scmp.lt.u32.totalorder %s709_s30, %s828_s1 }
  0x17   :  { %p715_p10 = pnand %p713_p9, %p710_p8 }
  0x19   :  { %718 = shalt.err (!%p715_p10)
}
  0x1a   :  { %s719_s8 = scalar_lea.vmem %s29_s27, 4608  ;;  %p724_p12 = scmp.lt.s32.totalorder %s29_s27, %s29_s27 }
  0x1b   :  { %p720_p11 = scmp.ne.s32.totalorder %s29_s27, %s719_s8  ;;  %p725_p13 = scmp.lt.s32.totalorder %s719_s8, %s719_s8 }
  0x1d   :  { %p726_p0 = por %p725_p13, %p724_p12 }
  0x1f   :  { %p727_p1 = pnand %p726_p0, %p720_p11 }
  0x21   :  { %730 = shalt.err (!%p727_p1)
}
  0x22   :  { %s763_s0 = smov 64   ;;  %s764_s9 = smov 4  }
  0x23   :  { %34 = dma.hbm_to_vmem [thread:$0]  %s828_s1, 4608, %s29_s27, [#allocation6], %s763_s0, %s763_s0, %s764_s9  }
  0x24   :  { %753 = dma.done.wait [#allocation3], 1280  }
  0x25   :  { %754 = vsyncadd [#allocation3], 4294966016 }
  0x26   :  { %755 = dma.done.wait [#allocation6], 4608  }
  0x27   :  { %756 = vsyncadd [#allocation6], 4294962688  ;;  %v651_v0 = vld [vmem:[#allocation5 + $0x40] sm:$0xff]   ;;  %v655_v4 = vld [vmem:[#allocation5 + $0x48] sm:$0xff]   ;;  %v765_v39 = vmov 0.0   ;;  %vm766_vm0 = vmmov 0  }
  0x28   :  { %v652_v1 = vld [vmem:[#allocation5 + $0xc0] sm:$0xff]   ;;  %573 = vmatprep.subr.bf16.mxu0 %v651_v0  ;;  %v656_v5 = vld [vmem:[#allocation5 + $0xc8] sm:$0xff]   ;;  %v659_v8 = vld [vmem:[#allocation5 + $0x50] sm:$0xff]   ;;  %vm347_vm1 = vcmask 523264   ;;  %s767_s13 = smov [#allocation7]   ;;  %vm518_vm2 = vcmask 122880  }
  0x29   :  { %v653_v2 = vld [vmem:[#allocation5] sm:$0xff]   ;;  %595 = vmatprep.subr.bf16.mxu1 %v652_v1  ;;  %v657_v6 = vld [vmem:[#allocation5 + $0x8] sm:$0xff]   ;;  %v660_v9 = vld [vmem:[#allocation5 + $0xd0] sm:$0xff]   ;;  %s526_s14 = sshll.u32 %s767_s13, 4  ;;  %s527_s14 = int_to_ptr.vmem [resolvable:$true] %s526_s14 }
  0x2a   :  { %v654_v3 = vld [vmem:[#allocation5 + $0x80] sm:$0xff]   ;;  %574 = vmatpush3.bf16.msra.mxu0 %v653_v2  ;;  %v658_v7 = vld [vmem:[#allocation5 + $0x88] sm:$0xff]   ;;  %v661_v10 = vld [vmem:[#allocation5 + $0x10] sm:$0xff]   ;;  %s731_s15 = scalar_lea.vmem %s527_s14, 16  ;;  %s735_s16 = scalar_lea.vmem %s527_s14, 32 }
  0x2b   :  { %596 = vmatpush3.bf16.msra.mxu1 %v654_v3  ;;  %575 = vmatprep.subr.bf16.mxu0 %v655_v4  ;;  %v662_v11 = vld [vmem:[#allocation5 + $0x90] sm:$0xff]   ;;  %v663_v12 = vld [vmem:[#allocation5 + $0x58] sm:$0xff]   ;;  %v667_v16 = vld [vmem:[#allocation5 + $0x60] sm:$0xff]   ;;  %p732_p2 = scmp.ne.s32.totalorder %s527_s14, %s731_s15  ;;  %p736_p3 = scmp.lt.s32.totalorder %s527_s14, %s527_s14 }
  0x2c   :  { %597 = vmatprep.subr.bf16.mxu1 %v656_v5  ;;  %v664_v13 = vld [vmem:[#allocation5 + $0xd8] sm:$0xff]   ;;  %v668_v17 = vld [vmem:[#allocation5 + $0xe0] sm:$0xff]   ;;  %v671_v20 = vld [vmem:[#allocation5 + $0x68] sm:$0xff]   ;;  %p737_p4 = scmp.lt.s32.totalorder %s735_s16, %s731_s15 }
  0x2d   :  { %v665_v14 = vld [vmem:[#allocation5 + $0x18] sm:$0xff]   ;;  %v669_v18 = vld [vmem:[#allocation5 + $0x20] sm:$0xff]   ;;  %v672_v21 = vld [vmem:[#allocation5 + $0xe8] sm:$0xff]  }
  0x2e   :  { %576 = vmatpush3.bf16.msra.mxu0 %v657_v6  ;;  %v666_v15 = vld [vmem:[#allocation5 + $0x98] sm:$0xff]   ;;  %v670_v19 = vld [vmem:[#allocation5 + $0xa0] sm:$0xff]   ;;  %v673_v22 = vld [vmem:[#allocation5 + $0x28] sm:$0xff]   ;;  %p738_p5 = por %p737_p4, %p736_p3 }
  0x2f   :  { %598 = vmatpush3.bf16.msra.mxu1 %v658_v7  ;;  %577 = vmatprep.subr.bf16.mxu0 %v659_v8  ;;  %v674_v23 = vld [vmem:[#allocation5 + $0xa8] sm:$0xff]   ;;  %v675_v24 = vld [vmem:[#allocation5 + $0x70] sm:$0xff]   ;;  %v679_v28 = vld [vmem:[#allocation5 + $0x78] sm:$0xff]  }
  0x30   :  { %599 = vmatprep.subr.bf16.mxu1 %v660_v9  ;;  %v676_v25 = vld [vmem:[#allocation5 + $0xf0] sm:$0xff]   ;;  %v680_v29 = vld [vmem:[#allocation5 + $0xf8] sm:$0xff]   ;;  %v50_v33 = vld [vmem:[#allocation2 + $0x30] sm:$0xff]  ;;  %p739_p6 = pnand %p738_p5, %p732_p2 }
  0x31   :  { %v677_v26 = vld [vmem:[#allocation5 + $0x30] sm:$0xff]   ;;  %v681_v30 = vld [vmem:[#allocation5 + $0x38] sm:$0xff]   ;;  %v47_v34 = vld [vmem:[#allocation2 + $0x18] sm:$0xff] }
  0x32   :  { %578 = vmatpush3.bf16.msra.mxu0 %v661_v10  ;;  %v678_v27 = vld [vmem:[#allocation5 + $0xb0] sm:$0xff]   ;;  %v682_v31 = vld [vmem:[#allocation5 + $0xb8] sm:$0xff]   ;;  %v46_v42 = vld [vmem:[#allocation2 + $0x10] sm:$0xff] }
  0x33   :  { %600 = vmatpush3.bf16.msra.mxu1 %v662_v11  ;;  %579 = vmatprep.subr.bf16.mxu0 %v663_v12  ;;  %v45_v32 = vld [vmem:[#allocation2 + $0x8] sm:$0xff]  ;;  %v52_v36 = vld [vmem:[#allocation2 + $0x40] sm:$0xff]  ;;  %v51_v43 = vld [vmem:[#allocation2 + $0x38] sm:$0xff] }
  0x34   :  { %601 = vmatprep.subr.bf16.mxu1 %v664_v13  ;;  %v55_v35 = vpack.c.bf16 %v50_v33, %v45_v32  ;;  %v44_v37 = vld [vmem:[#allocation2] sm:$0xff]  ;;  %v49_v38 = vld [vmem:[#allocation2 + $0x28] sm:$0xff]  ;;  %v57_v40 = vpack.c.bf16 %v52_v36, %v47_v34  ;;  %v56_v44 = vpack.c.bf16 %v51_v43, %v46_v42  ;;  %v683_v45 = vld [vmem:[#allocation5 + $0x100] sm:$0xff]  }
  0x35   :  { %v54_v41 = vpack.c.bf16 %v49_v38, %v44_v37  ;;  %v684_v46 = vld [vmem:[#allocation5 + $0x108] sm:$0xff]   ;;  %v685_v47 = vld [vmem:[#allocation5 + $0x110] sm:$0xff]   ;;  %v686_v48 = vld [vmem:[#allocation5 + $0x118] sm:$0xff]  }
  0x36   :  { %580 = vmatpush3.bf16.msra.mxu0 %v665_v14  ;;  %383 = vmatprep.mubr.bf16.mxu0 %v55_v35  ;;  %v48_v49 = vld [vmem:[#allocation2 + $0x20] sm:$0xff]  ;;  %v53_v50 = vld [vmem:[#allocation2 + $0x48] sm:$0xff] }
  0x37   :  { %602 = vmatpush3.bf16.msra.mxu1 %v666_v15  ;;  %581 = vmatprep.subr.bf16.mxu0 %v667_v16  ;;  %v58_v51 = vpack.c.bf16 %v53_v50, %v48_v49  ;;  %v477_v11 = vld [vmem:[%s829_s2] sm:$0x1] }
  0x38   :  { %603 = vmatprep.subr.bf16.mxu1 %v668_v17  ;;  %424 = vmatprep.mubr.bf16.mxu1 %v57_v40 }
  0x3a   :  { %582 = vmatpush3.bf16.msra.mxu0 %v669_v18 }
  0x3b   :  { %604 = vmatpush3.bf16.msra.mxu1 %v670_v19  ;;  %583 = vmatprep.subr.bf16.mxu0 %v671_v20 }
  0x3c   :  { %605 = vmatprep.subr.bf16.mxu1 %v672_v21 }
  0x3e   :  { %584 = vmatpush3.bf16.msra.mxu0 %v673_v22 }
  0x3f   :  { %606 = vmatpush3.bf16.msra.mxu1 %v674_v23  ;;  %585 = vmatprep.subr.bf16.mxu0 %v675_v24 }
  0x40   :  { %607 = vmatprep.subr.bf16.mxu1 %v676_v25 }
  0x42   :  { %586 = vmatpush3.bf16.msra.mxu0 %v677_v26 }
  0x43   :  { %608 = vmatpush3.bf16.msra.mxu1 %v678_v27  ;;  %587 = vmatprep.subr.bf16.mxu0 %v679_v28 }
  0x44   :  { %609 = vmatprep.subr.bf16.mxu1 %v680_v29 }
  0x46   :  { %588 = vmatpush3.bf16.msra.mxu0 %v681_v30 }
  0x47   :  { %610 = vmatpush3.bf16.msra.mxu1 %v682_v31  ;;  %624 = vmatprep.subr.bf16.mxu0 %v765_v39 }
  0x48   :  { %636 = vmatprep.subr.bf16.mxu1 %v765_v39 }
  0x49   :  { %384 = vmatmul.mubr.bf16.vlgmr.msra.gmra.mrb[0].mxu0 %v54_v41 }
  0x4a   :  { %425 = vmatmul.mubr.bf16.vlgmr.msra.gmra.mrb[0].mxu1 %v56_v44  ;;  %625 = vmatpush3.bf16.msra.mxu0 %v683_v45 }
  0x4b   :  { %626 = vmatprep.subr.bf16.mxu0 %v765_v39  ;;  %632 = vmatprep.mubr.msk.bf16.mxu0 %vm766_vm0, %v765_v39 }
  0x4c   :  { %638 = vmatprep.mubr.msk.bf16.mxu1 %vm766_vm0, %v765_v39 }
  0x4e   :  { %627 = vmatpush3.bf16.msra.mxu0 %v684_v46 }
  0x4f   :  { %628 = vmatprep.subr.bf16.mxu0 %v765_v39 }
  0x52   :  { %629 = vmatpush3.bf16.msra.mxu0 %v685_v47 }
  0x53   :  { %630 = vmatprep.subr.bf16.mxu0 %v765_v39 }
  0x56   :  { %631 = vmatpush3.bf16.msra.mxu0 %v686_v48 }
  0x59   :  { %633 = vmatmul.mubr.msk.bf16.vlgmr.msra.gmra.mrb[4].mxu0 %vm347_vm1, %v58_v51 }
 0x11c   :  { %v589_v52 = vpop.f32.mrb[0].mxu0 }
 0x11d   :  { %v611_v53 = vpop.f32.mrb[0].mxu1  ;;  %v590_v54 = vpop.f32.mrb[1].mxu0 }
 0x11e   :  { %v591_v55 = vadd.f32 %v590_v54, %v589_v52  ;;  %v612_v56 = vpop.f32.mrb[1].mxu1  ;;  %v592_v57 = vpop.f32.mrb[2].mxu0 }
 0x11f   :  { %v613_v58 = vadd.f32 %v612_v56, %v611_v53  ;;  %v614_v59 = vpop.f32.mrb[2].mxu1  ;;  %v593_v60 = vpop.f32.mrb[3].mxu0 }
 0x120   :  { %v594_v61 = vadd.f32 %v593_v60, %v592_v57  ;;  %v615_v62 = vpop.f32.mrb[3].mxu1 }
 0x121   :  { %v616_v63 = vadd.f32 %v615_v62, %v614_v59  ;;  %v427_v0 = vadd.f32 %v613_v58, %v591_v55 }
 0x123   :  { %v430_v1 = vadd.f32 %v616_v63, %v594_v61 }
 0x12c   :  { %v467_v2 = vpop.f32.mrb[4].mxu0 }
 0x12d   :  { %v468_v3 = vadd.f32 %v467_v2, %v427_v0  ;;  %v634_v4 = vpop.f32.mrb[5].mxu0 }
 0x12e   :  { %v470_v5 = vpop.f32.mrb[6].mxu0 }
 0x12f   :  { %v471_v6 = vadd.f32 %v470_v5, %v430_v1  ;;  %v635_v7 = vpop.f32.mrb[7].mxu0  ;;  %v474_v8 = vmax.f32 %v468_v3, 0.0 }
 0x131   :  { %v475_v9 = vmax.f32 %v471_v6, 0.0 }
 0x133   :  { %v476_v10 = vpack.c.bf16 %v475_v9, %v474_v8 }
 0x135   :  { %637 = vmatpush3.bf16.xpose.msra.mxu1 %v476_v10 }
 0x13c   :  { %639 = vmatmul.mubr.bf16.vlgmr.msra.gmra.mrb[4].mxu1 %v477_v11 }
 0x20f   :  { %v512_v12 = vpop.f32.mrb[4].mxu1 }
 0x210   :  { %v640_v13 = vpop.f32.mrb[5].mxu1  ;;  %519 = vst.msk [vmem:[#allocation7] sm:$0x1] %vm518_vm2, %v512_v12 }
 0x211   :  { %v515_v14 = vpop.f32.mrb[6].mxu1 }
 0x212   :  { %742 = shalt.err (!%p739_p6)
}
 0x213   :  { %s743_s2 = scalar_lea.hbm %s830_s3, 16 }
 0x214   :  { %p744_p7 = scmp.ne.s32.totalorder %s830_s3, %s743_s2  ;;  %p747_p8 = scmp.lt.u32.totalorder %s743_s2, %s830_s3 }
 0x216   :  { %p749_p9 = pnand %p747_p8, %p744_p7 }
 0x218   :  { %752 = shalt.err (!%p749_p9)
}
 0x219   :  { %529 = dma.vmem_to_hbm [thread:$0]  %s527_s14, 16, %s830_s3, [#allocation4]   ;;  %v641_v15 = vpop.f32.mrb[7].mxu1 }
 0x21a   :  { %757 = dma.done.wait [#allocation4], 16  }
 0x21b   :  { %758 = vsyncadd [#allocation4], 4294967280 }
 0x21c   :  { %533 = vsyncpa [#allocation3], 1 }
 0x21d   :  { %534 = vsyncpa [#allocation6], 1 }
 0x21e   :  { %535 = vsyncpa [#allocation4], 1 }

</bundles_post_ra>
